<compile_context>
chip_gen: v6e
topology: v6e:2x2x1
jax: 0.10.0
libtpu: 0.0.40
codegen_flags: <defaults>
</compile_context>

<pallas_src>
import functools

import jax
import jax.numpy as jnp
from jax.experimental import pallas as pl
from jax.experimental.pallas import tpu as pltpu

# ---- small config consistent with the module ----
BATCH = 2
SEQ = 8
HIDDEN = 32
VOCAB_SIZE = 128            # word_embeddings rows (row 0 = padding_idx -> zeros)
MAX_POSITIONS = 128         # position_embeddings rows
TYPE_VOCAB_SIZE = 2         # token_type_embeddings rows
LN_EPS = 1e-12
# TODO(synk): hidden_dropout_prob is not applied (nn.Dropout is identity at eval time).


def _embeddings_kernel(ids_ref, pos_ids_ref, type_ids_ref,
                       word_ref, pos_ref, type_ref,
                       gamma_ref, beta_ref, o_ref, *, eps):
    bs = ids_ref.shape[0]          # B * S tokens
    h = word_ref.shape[1]

    def one_hot_gather(ids_2d, table_ref):
        # ids_2d: (BS, 1) int32; table: (N, H).  Gather as a lane-dense
        # one-hot (BS, N) @ (N, H) MXU matmul.
        n = table_ref.shape[0]
        col = jax.lax.broadcasted_iota(jnp.int32, (bs, n), 1)
        onehot = (col == ids_2d).astype(jnp.float32)
        return jnp.dot(onehot, table_ref[...], preferred_element_type=jnp.float32)

    ids = ids_ref[...]             # (BS, 1) int32
    pos_ids = pos_ids_ref[...]     # (BS, 1) int32
    tt = type_ids_ref[...]         # (BS, 1) int32

    # word + position embeddings via one-hot MXU gathers
    emb = one_hot_gather(ids, word_ref) + one_hot_gather(pos_ids, pos_ref)

    # token-type embeddings: tiny vocab -> select-accumulate (no 2-lane matmul)
    for t in range(type_ref.shape[0]):
        row = type_ref[t:t + 1, :]                      # (1, H) static slice
        emb = emb + jnp.where(tt == t, 1.0, 0.0) * row  # (BS,1)*(1,H) -> (BS,H)

    # LayerNorm over the hidden dim (lanes), fused in-kernel
    mu = jnp.mean(emb, axis=-1, keepdims=True)
    xc = emb - mu
    var = jnp.mean(xc * xc, axis=-1, keepdims=True)
    inv = jax.lax.rsqrt(var + eps)                      # EUP rsqrt
    y = xc * inv * gamma_ref[...] + beta_ref[...]

    # single lane-dense full-tile store
    o_ref[...] = y.astype(o_ref.dtype)


def bert_embeddings(input_ids, token_type_ids,
                    word_table, pos_table, type_table,
                    gamma, beta, *, eps=LN_EPS):
    B, S = input_ids.shape
    V, H = word_table.shape
    P = pos_table.shape[0]
    T = type_table.shape[0]
    BS = B * S

    # flatten ids to (B*S, 1) so the kernel works on one lane-dense slab
    ids = input_ids.reshape(BS, 1).astype(jnp.int32)
    tt = token_type_ids.reshape(BS, 1).astype(jnp.int32)
    position_ids = jnp.tile(jnp.arange(S, dtype=jnp.int32), (B,)).reshape(BS, 1)

    gamma2 = gamma.reshape(1, H)
    beta2 = beta.reshape(1, H)

    full = lambda i: (0, 0)

    out = pl.pallas_call(
        functools.partial(_embeddings_kernel, eps=eps),
        out_shape=jax.ShapeDtypeStruct((BS, H), jnp.float32),
        grid=(1,),
        in_specs=[
            pl.BlockSpec((BS, 1), full),   # input_ids
            pl.BlockSpec((BS, 1), full),   # position_ids
            pl.BlockSpec((BS, 1), full),   # token_type_ids
            pl.BlockSpec((V, H), full),    # word_embeddings
            pl.BlockSpec((P, H), full),    # position_embeddings
            pl.BlockSpec((T, H), full),    # token_type_embeddings
            pl.BlockSpec((1, H), full),    # LayerNorm gamma
            pl.BlockSpec((1, H), full),    # LayerNorm beta
        ],
        out_specs=pl.BlockSpec((BS, H), full),
        compiler_params=pltpu.CompilerParams(
            dimension_semantics=("arbitrary",)),
    )(ids, position_ids, tt, word_table, pos_table, type_table, gamma2, beta2)

    return out.reshape(B, S, H)


def _reference(input_ids, token_type_ids, word_table, pos_table, type_table,
               gamma, beta, eps=LN_EPS):
    B, S = input_ids.shape
    words = word_table[input_ids]                                   # (B,S,H)
    pos = pos_table[jnp.arange(S)][None, :, :]                      # (1,S,H)
    types = type_table[token_type_ids]                              # (B,S,H)
    emb = words + pos + types
    mu = emb.mean(-1, keepdims=True)
    var = ((emb - mu) ** 2).mean(-1, keepdims=True)
    return (emb - mu) * jax.lax.rsqrt(var + eps) * gamma + beta


if __name__ == "__main__":
    key = jax.random.PRNGKey(0)
    keys = jax.random.split(key, 8)

    # token ids (include some padding_idx=0 tokens) and token-type ids
    input_ids = jax.random.randint(keys[0], (BATCH, SEQ), 0, VOCAB_SIZE, jnp.int32)
    input_ids = input_ids.at[0, -2:].set(0)              # padding tokens
    token_type_ids = jnp.concatenate(
        [jnp.zeros((BATCH, SEQ // 2), jnp.int32),
         jnp.ones((BATCH, SEQ // 2), jnp.int32)], axis=1)

    std = 0.02
    word_table = std * jax.random.normal(keys[1], (VOCAB_SIZE, HIDDEN), jnp.float32)
    word_table = word_table.at[0].set(0.0)               # padding_idx=0 row is zeros
    pos_table = std * jax.random.normal(keys[2], (MAX_POSITIONS, HIDDEN), jnp.float32)
    type_table = std * jax.random.normal(keys[3], (TYPE_VOCAB_SIZE, HIDDEN), jnp.float32)
    gamma = 1.0 + 0.1 * jax.random.normal(keys[4], (HIDDEN,), jnp.float32)
    beta = 0.1 * jax.random.normal(keys[5], (HIDDEN,), jnp.float32)

    out = bert_embeddings(input_ids, token_type_ids,
                          word_table, pos_table, type_table, gamma, beta)
    out = jax.block_until_ready(out)

    ref = _reference(input_ids, token_type_ids,
                     word_table, pos_table, type_table, gamma, beta)
    assert out.shape == (BATCH, SEQ, HIDDEN)
    assert jnp.allclose(out, ref, atol=1e-5, rtol=1e-5), "mismatch vs reference"

    print("KERNEL_OK")
</pallas_src>

<mosaic_0001>
module attributes {stable_mosaic.version = 11 : i64} {
  func.func @_embeddings_kernel(%arg0: i32, %arg1: memref<16x1xi32, #tpu.memory_space<vmem>>, %arg2: memref<16x1xi32, #tpu.memory_space<vmem>>, %arg3: memref<16x1xi32, #tpu.memory_space<vmem>>, %arg4: memref<128x32xf32, #tpu.memory_space<vmem>>, %arg5: memref<128x32xf32, #tpu.memory_space<vmem>>, %arg6: memref<2x32xf32, #tpu.memory_space<vmem>>, %arg7: memref<1x32xf32, #tpu.memory_space<vmem>>, %arg8: memref<1x32xf32, #tpu.memory_space<vmem>>, %arg9: memref<16x32xf32, #tpu.memory_space<vmem>>) attributes {dimension_semantics = [#tpu.dimension_semantics<arbitrary>], iteration_bounds = array<i64: 1>, scalar_prefetch = 0 : i64, scratch_operands = 0 : i64, tpu.core_type = #tpu.core_type<tc>, window_params = [{pipeline_mode = #tpu.pipeline_mode<synchronous>, transform_indices = @transform_0, window_bounds = array<i64: 16, 1>}, {pipeline_mode = #tpu.pipeline_mode<synchronous>, transform_indices = @transform_1, window_bounds = array<i64: 16, 1>}, {pipeline_mode = #tpu.pipeline_mode<synchronous>, transform_indices = @transform_2, window_bounds = array<i64: 16, 1>}, {pipeline_mode = #tpu.pipeline_mode<synchronous>, transform_indices = @transform_3, window_bounds = array<i64: 128, 32>}, {pipeline_mode = #tpu.pipeline_mode<synchronous>, transform_indices = @transform_4, window_bounds = array<i64: 128, 32>}, {pipeline_mode = #tpu.pipeline_mode<synchronous>, transform_indices = @transform_5, window_bounds = array<i64: 2, 32>}, {pipeline_mode = #tpu.pipeline_mode<synchronous>, transform_indices = @transform_6, window_bounds = array<i64: 1, 32>}, {pipeline_mode = #tpu.pipeline_mode<synchronous>, transform_indices = @transform_7, window_bounds = array<i64: 1, 32>}, {pipeline_mode = #tpu.pipeline_mode<synchronous>, transform_indices = @transform_8, window_bounds = array<i64: 16, 32>}]} {
    %c0 = arith.constant 0 : index
    %c0_0 = arith.constant 0 : index
    %0 = vector.load %arg1[%c0, %c0_0] : memref<16x1xi32, #tpu.memory_space<vmem>>, vector<16x1xi32>
    %c0_1 = arith.constant 0 : index
    %c0_2 = arith.constant 0 : index
    %1 = vector.load %arg2[%c0_1, %c0_2] : memref<16x1xi32, #tpu.memory_space<vmem>>, vector<16x1xi32>
    %c0_3 = arith.constant 0 : index
    %c0_4 = arith.constant 0 : index
    %2 = vector.load %arg3[%c0_3, %c0_4] : memref<16x1xi32, #tpu.memory_space<vmem>>, vector<16x1xi32>
    %3 = tpu.iota {dimensions = array<i32: 1>} : vector<16x128xi32>
    %4 = vector.broadcast %0 : vector<16x1xi32> to vector<16x128xi32>
    %5 = arith.cmpi eq, %3, %4 : vector<16x128xi32>
    %6 = arith.extui %5 : vector<16x128xi1> to vector<16x128xi32>
    %7 = arith.sitofp %6 : vector<16x128xi32> to vector<16x128xf32>
    %c0_5 = arith.constant 0 : index
    %c0_6 = arith.constant 0 : index
    %8 = vector.load %arg4[%c0_5, %c0_6] : memref<128x32xf32, #tpu.memory_space<vmem>>, vector<128x32xf32>
    %cst = arith.constant dense<0.000000e+00> : vector<16x32xf32>
    %9 = tpu.matmul %7, %8, %cst {dimension_numbers = #tpu.dot_dimension_numbers<[1], [0], [0], [1], [0, 0, 1, 1], [], []>} : vector<16x128xf32>, vector<128x32xf32>, vector<16x32xf32> -> vector<16x32xf32>
    %10 = tpu.iota {dimensions = array<i32: 1>} : vector<16x128xi32>
    %11 = vector.broadcast %1 : vector<16x1xi32> to vector<16x128xi32>
    %12 = arith.cmpi eq, %10, %11 : vector<16x128xi32>
    %13 = arith.extui %12 : vector<16x128xi1> to vector<16x128xi32>
    %14 = arith.sitofp %13 : vector<16x128xi32> to vector<16x128xf32>
    %c0_7 = arith.constant 0 : index
    %c0_8 = arith.constant 0 : index
    %15 = vector.load %arg5[%c0_7, %c0_8] : memref<128x32xf32, #tpu.memory_space<vmem>>, vector<128x32xf32>
    %cst_9 = arith.constant dense<0.000000e+00> : vector<16x32xf32>
    %16 = tpu.matmul %14, %15, %cst_9 {dimension_numbers = #tpu.dot_dimension_numbers<[1], [0], [0], [1], [0, 0, 1, 1], [], []>} : vector<16x128xf32>, vector<128x32xf32>, vector<16x32xf32> -> vector<16x32xf32>
    %17 = arith.addf %9, %16 : vector<16x32xf32>
    %c0_10 = arith.constant 0 : index
    %c0_11 = arith.constant 0 : index
    %18 = vector.load %arg6[%c0_10, %c0_11] : memref<2x32xf32, #tpu.memory_space<vmem>>, vector<1x32xf32>
    %c0_i32 = arith.constant 0 : i32
    %19 = vector.broadcast %c0_i32 : i32 to vector<16x1xi32>
    %20 = arith.cmpi eq, %2, %19 : vector<16x1xi32>
    %cst_12 = arith.constant 1.000000e+00 : f32
    %cst_13 = arith.constant 0.000000e+00 : f32
    %21 = vector.broadcast %cst_12 : f32 to vector<16x1xf32>
    %22 = vector.broadcast %cst_13 : f32 to vector<16x1xf32>
    %23 = arith.select %20, %21, %22 : vector<16x1xi1>, vector<16x1xf32>
    %24 = vector.broadcast %23 : vector<16x1xf32> to vector<16x32xf32>
    %25 = vector.broadcast %18 : vector<1x32xf32> to vector<16x32xf32>
    %26 = arith.mulf %24, %25 : vector<16x32xf32>
    %27 = arith.addf %17, %26 : vector<16x32xf32>
    %c1 = arith.constant 1 : index
    %c0_14 = arith.constant 0 : index
    %28 = vector.load %arg6[%c1, %c0_14] : memref<2x32xf32, #tpu.memory_space<vmem>>, vector<1x32xf32>
    %c1_i32 = arith.constant 1 : i32
    %29 = vector.broadcast %c1_i32 : i32 to vector<16x1xi32>
    %30 = arith.cmpi eq, %2, %29 : vector<16x1xi32>
    %cst_15 = arith.constant 1.000000e+00 : f32
    %cst_16 = arith.constant 0.000000e+00 : f32
    %31 = vector.broadcast %cst_15 : f32 to vector<16x1xf32>
    %32 = vector.broadcast %cst_16 : f32 to vector<16x1xf32>
    %33 = arith.select %30, %31, %32 : vector<16x1xi1>, vector<16x1xf32>
    %34 = vector.broadcast %33 : vector<16x1xf32> to vector<16x32xf32>
    %35 = vector.broadcast %28 : vector<1x32xf32> to vector<16x32xf32>
    %36 = arith.mulf %34, %35 : vector<16x32xf32>
    %37 = arith.addf %27, %36 : vector<16x32xf32>
    %cst_17 = arith.constant dense<0.000000e+00> : vector<16xf32>
    %38 = vector.multi_reduction <add>, %37, %cst_17 [1] : vector<16x32xf32> to vector<16xf32>
    %39 = vector.shape_cast %38 : vector<16xf32> to vector<16x1xf32>
    %cst_18 = arith.constant 3.200000e+01 : f32
    %40 = vector.broadcast %cst_18 : f32 to vector<16x1xf32>
    %41 = arith.divf %39, %40 : vector<16x1xf32>
    %42 = vector.broadcast %41 : vector<16x1xf32> to vector<16x32xf32>
    %43 = arith.subf %37, %42 : vector<16x32xf32>
    %44 = arith.mulf %43, %43 : vector<16x32xf32>
    %cst_19 = arith.constant dense<0.000000e+00> : vector<16xf32>
    %45 = vector.multi_reduction <add>, %44, %cst_19 [1] : vector<16x32xf32> to vector<16xf32>
    %46 = vector.shape_cast %45 : vector<16xf32> to vector<16x1xf32>
    %cst_20 = arith.constant 3.200000e+01 : f32
    %47 = vector.broadcast %cst_20 : f32 to vector<16x1xf32>
    %48 = arith.divf %46, %47 : vector<16x1xf32>
    %cst_21 = arith.constant 9.99999996E-13 : f32
    %49 = vector.broadcast %cst_21 : f32 to vector<16x1xf32>
    %50 = arith.addf %48, %49 : vector<16x1xf32>
    %51 = math.rsqrt %50 : vector<16x1xf32>
    %52 = vector.broadcast %51 : vector<16x1xf32> to vector<16x32xf32>
    %53 = arith.mulf %43, %52 : vector<16x32xf32>
    %c0_22 = arith.constant 0 : index
    %c0_23 = arith.constant 0 : index
    %54 = vector.load %arg7[%c0_22, %c0_23] : memref<1x32xf32, #tpu.memory_space<vmem>>, vector<1x32xf32>
    %55 = vector.broadcast %54 : vector<1x32xf32> to vector<16x32xf32>
    %56 = arith.mulf %53, %55 : vector<16x32xf32>
    %c0_24 = arith.constant 0 : index
    %c0_25 = arith.constant 0 : index
    %57 = vector.load %arg8[%c0_24, %c0_25] : memref<1x32xf32, #tpu.memory_space<vmem>>, vector<1x32xf32>
    %58 = vector.broadcast %57 : vector<1x32xf32> to vector<16x32xf32>
    %59 = arith.addf %56, %58 : vector<16x32xf32>
    %c0_26 = arith.constant 0 : index
    %c0_27 = arith.constant 0 : index
    %60 = vector.load %arg9[%c0_26, %c0_27] : memref<16x32xf32, #tpu.memory_space<vmem>>, vector<16x32xf32>
    tpu.vector_store %arg9[%c0_26, %c0_27], %59 {strides = array<i32>} : memref<16x32xf32, #tpu.memory_space<vmem>>, vector<16x32xf32>,
    return
  }
  func.func @transform_0(%arg0: i32) -> (i32, i32) {
    %c0_i32 = arith.constant 0 : i32
    %c0_i32_0 = arith.constant 0 : i32
    %c0_i32_1 = arith.constant 0 : i32
    return %c0_i32, %c0_i32_0 : i32, i32
  }
  func.func @transform_1(%arg0: i32) -> (i32, i32) {
    %c0_i32 = arith.constant 0 : i32
    %c0_i32_0 = arith.constant 0 : i32
    %c0_i32_1 = arith.constant 0 : i32
    return %c0_i32, %c0_i32_0 : i32, i32
  }
  func.func @transform_2(%arg0: i32) -> (i32, i32) {
    %c0_i32 = arith.constant 0 : i32
    %c0_i32_0 = arith.constant 0 : i32
    %c0_i32_1 = arith.constant 0 : i32
    return %c0_i32, %c0_i32_0 : i32, i32
  }
  func.func @transform_3(%arg0: i32) -> (i32, i32) {
    %c0_i32 = arith.constant 0 : i32
    %c0_i32_0 = arith.constant 0 : i32
    %c0_i32_1 = arith.constant 0 : i32
    return %c0_i32, %c0_i32_0 : i32, i32
  }
  func.func @transform_4(%arg0: i32) -> (i32, i32) {
    %c0_i32 = arith.constant 0 : i32
    %c0_i32_0 = arith.constant 0 : i32
    %c0_i32_1 = arith.constant 0 : i32
    return %c0_i32, %c0_i32_0 : i32, i32
  }
  func.func @transform_5(%arg0: i32) -> (i32, i32) {
    %c0_i32 = arith.constant 0 : i32
    %c0_i32_0 = arith.constant 0 : i32
    %c0_i32_1 = arith.constant 0 : i32
    return %c0_i32, %c0_i32_0 : i32, i32
  }
  func.func @transform_6(%arg0: i32) -> (i32, i32) {
    %c0_i32 = arith.constant 0 : i32
    %c0_i32_0 = arith.constant 0 : i32
    %c0_i32_1 = arith.constant 0 : i32
    return %c0_i32, %c0_i32_0 : i32, i32
  }
  func.func @transform_7(%arg0: i32) -> (i32, i32) {
    %c0_i32 = arith.constant 0 : i32
    %c0_i32_0 = arith.constant 0 : i32
    %c0_i32_1 = arith.constant 0 : i32
    return %c0_i32, %c0_i32_0 : i32, i32
  }
  func.func @transform_8(%arg0: i32) -> (i32, i32) {
    %c0_i32 = arith.constant 0 : i32
    %c0_i32_0 = arith.constant 0 : i32
    %c0_i32_1 = arith.constant 0 : i32
    return %c0_i32, %c0_i32_0 : i32, i32
  }
}

</mosaic_0001>

<bundles_post_ra>
// kernel: tpu_custom_call.1
= control target key start
LH: loop header
LB: loop body
LE: loop exit
PB: predicated region body
PF: predicated region fallthrough
CT: control target
= control target key end

     0   :  { %v516_v2 = vmov 0   ;;  %v517_v9 = vmov 0.0   ;;  %s702_s0 = inlined_call_operand.vmem [shape: s32[16,1], index: 0, kind: input, shape index: {}]   ;;  %s703_s1 = inlined_call_operand.vmem [shape: s32[16,1], index: 1, kind: input, shape index: {}]   ;;  %s704_s2 = inlined_call_operand.vmem [shape: s32[16,1], index: 2, kind: input, shape index: {}]   ;;  %s705_s3 = inlined_call_operand.vmem [shape: f32[128,32], index: 3, kind: input, shape index: {}]   ;;  %s706_s4 = inlined_call_operand.vmem [shape: f32[128,32], index: 4, kind: input, shape index: {}]   ;;  %s707_s5 = inlined_call_operand.vmem [shape: f32[2,32], index: 5, kind: input, shape index: {}]   ;;  %s708_s6 = inlined_call_operand.vmem [shape: f32[1,32], index: 6, kind: input, shape index: {}]   ;;  %s709_s7 = inlined_call_operand.vmem [shape: f32[1,32], index: 7, kind: input, shape index: {}]   ;;  %s710_s8 = inlined_call_operand.hbm [shape: f32[16,32], index: 8, kind: output, shape index: {}]  }
   0x1   :  { %v31_v0 = vld [vmem:[%s702_s0 + $0x8] sm:$0xff]  ;;  %v30_v1 = vld [vmem:[%s702_s0] sm:$0xff]  ;;  %479 = vset.pattern.permute.xlu1 %v516_v2  ;;  %478 = vset.pattern.permute.xlu0 %v516_v2  ;;  %v65_v6 = vld [vmem:[%s705_s3 + $0x78] sm:$0xff] }
   0x2   :  { %v33_v3 = vld [vmem:[%s703_s1 + $0x8] sm:$0xff]  ;;  %v34_v4 = vld [vmem:[%s704_s2] sm:$0xff]  ;;  %42 = vperm.xlu1 %479, %v31_v0   ;;  %39 = vperm.xlu0 %478, %v30_v1   ;;  %v64_v7 = vld [vmem:[%s705_s3 + $0x70] sm:$0xff] }
   0x3   :  { %v35_v5 = vld [vmem:[%s704_s2 + $0x8] sm:$0xff]  ;;  %vm268_vm0 = vcmp.eq.s32.totalorder %v34_v4, 1  ;;  %vm245_vm2 = vcmp.eq.s32.totalorder %v34_v4, 0  ;;  %v32_v8 = vld [vmem:[%s703_s1] sm:$0xff]  ;;  %437 = vmatprep.subr.mxu1 %v65_v6  ;;  %v93_v14 = vld [vmem:[%s706_s4 + $0x78] sm:$0xff] }
   0x4   :  { %vm269_vm1 = vcmp.eq.s32.totalorder %v35_v5, 1  ;;  %vm246_vm3 = vcmp.eq.s32.totalorder %v35_v5, 0  ;;  %v270_v10 = vsel %vm268_vm0, 1.0, %v517_v9  ;;  %v247_v12 = vsel %vm245_vm2, 1.0, %v517_v9  ;;  %438 = vmatpush3.msra.mxu1 %v65_v6  ;;  %402 = vmatprep.subr.mxu0 %v93_v14  ;;  %v92_v15 = vld [vmem:[%s706_s4 + $0x70] sm:$0xff]  ;;  %v63_v16 = vld [vmem:[%s705_s3 + $0x68] sm:$0xff] }
   0x5   :  { %v271_v11 = vsel %vm269_vm1, 1.0, %v517_v9  ;;  %v248_v13 = vsel %vm246_vm3, 1.0, %v517_v9  ;;  %439 = vmatprep.subr.mxu1 %v64_v7  ;;  %403 = vmatpush3.msra.mxu0 %v93_v14  ;;  %v91_v19 = vld [vmem:[%s706_s4 + $0x68] sm:$0xff]  ;;  %v62_v20 = vld [vmem:[%s705_s3 + $0x60] sm:$0xff]  ;;  %v61_v22 = vld [vmem:[%s705_s3 + $0x58] sm:$0xff] }
   0x6   :  { %70 = vperm.xlu1 %479, %v33_v3   ;;  %67 = vperm.xlu0 %478, %v32_v8   ;;  %v485_v17 = vpack.i.bf16 %v271_v11, %v270_v10  ;;  %v480_v18 = vpack.i.bf16 %v248_v13, %v247_v12  ;;  %v90_v21 = vld [vmem:[%s706_s4 + $0x60] sm:$0xff]  ;;  %v89_v23 = vld [vmem:[%s706_s4 + $0x58] sm:$0xff]  ;;  %v60_v24 = vld [vmem:[%s705_s3 + $0x50] sm:$0xff] }
   0x7   :  { %440 = vmatpush3.msra.mxu1 %v64_v7  ;;  %404 = vmatprep.subr.mxu0 %v92_v15  ;;  %v88_v25 = vld [vmem:[%s706_s4 + $0x50] sm:$0xff]  ;;  %v59_v26 = vld [vmem:[%s705_s3 + $0x48] sm:$0xff] }
   0x8   :  { %441 = vmatprep.subr.mxu1 %v63_v16  ;;  %405 = vmatpush3.msra.mxu0 %v92_v15 }
   0x9   :  { %442 = vmatpush3.msra.mxu1 %v63_v16  ;;  %406 = vmatprep.subr.mxu0 %v91_v19 }
   0xa   :  { %486 = vperm.xlu1 %479, %v485_v17   ;;  %481 = vperm.xlu0 %478, %v480_v18  }
   0xb   :  { %443 = vmatprep.subr.mxu1 %v62_v20  ;;  %407 = vmatpush3.msra.mxu0 %v91_v19 }
   0xc   :  { %444 = vmatpush3.msra.mxu1 %v62_v20  ;;  %408 = vmatprep.subr.mxu0 %v90_v21 }
   0xd   :  { %445 = vmatprep.subr.mxu1 %v61_v22  ;;  %409 = vmatpush3.msra.mxu0 %v90_v21 }
   0xe   :  { %446 = vmatpush3.msra.mxu1 %v61_v22  ;;  %410 = vmatprep.subr.mxu0 %v89_v23 }
   0xf   :  { %13 = vsyncpa [#allocation3], 0  ;;  %447 = vmatprep.subr.mxu1 %v60_v24  ;;  %411 = vmatpush3.msra.mxu0 %v89_v23  ;;  %v87_v27 = vld [vmem:[%s706_s4 + $0x48] sm:$0xff]  ;;  %v58_v28 = vld [vmem:[%s705_s3 + $0x40] sm:$0xff]  ;;  %v36_v46 = vlaneseq  ;;  %v518_v50 = vmov 1.0   ;;  %vm290_vm8 = vcmask 261120  }
  0x10   :  { %448 = vmatpush3.msra.mxu1 %v60_v24  ;;  %412 = vmatprep.subr.mxu0 %v88_v25  ;;  %v86_v29 = vld [vmem:[%s706_s4 + $0x40] sm:$0xff]  ;;  %v57_v30 = vld [vmem:[%s705_s3 + $0x38] sm:$0xff]  ;;  %v56_v32 = vld [vmem:[%s705_s3 + $0x30] sm:$0xff]  ;;  %s519_s11 = smov [#allocation2]  }
  0x11   :  { %449 = vmatprep.subr.mxu1 %v59_v26  ;;  %413 = vmatpush3.msra.mxu0 %v88_v25  ;;  %v85_v31 = vld [vmem:[%s706_s4 + $0x38] sm:$0xff]  ;;  %v84_v33 = vld [vmem:[%s706_s4 + $0x30] sm:$0xff]  ;;  %v55_v34 = vld [vmem:[%s705_s3 + $0x28] sm:$0xff]  ;;  %v37_v47 = vand.u32 127, %v36_v46  ;;  %s343_s12 = sshll.u32 %s519_s11, 4  ;;  %s344_s12 = int_to_ptr.vmem [resolvable:$true] %s343_s12 }
  0x12   :  { %450 = vmatpush3.msra.mxu1 %v59_v26  ;;  %414 = vmatprep.subr.mxu0 %v87_v27  ;;  %v83_v35 = vld [vmem:[%s706_s4 + $0x28] sm:$0xff]  ;;  %v54_v36 = vld [vmem:[%s705_s3 + $0x20] sm:$0xff]  ;;  %v53_v38 = vld [vmem:[%s705_s3 + $0x18] sm:$0xff]  ;;  %s494_s13 = scalar_lea.vmem %s344_s12, 256  ;;  %p499_p1 = scmp.lt.s32.totalorder %s344_s12, %s344_s12 }
  0x13   :  { %451 = vmatprep.subr.mxu1 %v58_v28  ;;  %415 = vmatpush3.msra.mxu0 %v87_v27  ;;  %v82_v37 = vld [vmem:[%s706_s4 + $0x20] sm:$0xff]  ;;  %v81_v39 = vld [vmem:[%s706_s4 + $0x18] sm:$0xff]  ;;  %v52_v40 = vld [vmem:[%s705_s3 + $0x10] sm:$0xff]  ;;  %p495_p0 = scmp.ne.s32.totalorder %s344_s12, %s494_s13  ;;  %p500_p2 = scmp.lt.s32.totalorder %s494_s13, %s494_s13 }
  0x14   :  { %452 = vmatpush3.msra.mxu1 %v58_v28  ;;  %416 = vmatprep.subr.mxu0 %v86_v29  ;;  %v80_v41 = vld [vmem:[%s706_s4 + $0x10] sm:$0xff]  ;;  %v51_v42 = vld [vmem:[%s705_s3 + $0x8] sm:$0xff]  ;;  %v50_v44 = vld [vmem:[%s705_s3] sm:$0xff] }
  0x15   :  { %453 = vmatprep.subr.mxu1 %v57_v30  ;;  %417 = vmatpush3.msra.mxu0 %v86_v29  ;;  %v79_v43 = vld [vmem:[%s706_s4 + $0x8] sm:$0xff]  ;;  %v78_v45 = vld [vmem:[%s706_s4] sm:$0xff]  ;;  %p501_p3 = por %p500_p2, %p499_p1 }
  0x16   :  { %454 = vmatpush3.msra.mxu1 %v57_v30  ;;  %418 = vmatprep.subr.mxu0 %v85_v31  ;;  %v362_v56 = vld [vmem:[%s707_s5] ss:$0 sm:$0xff]  ;;  %v363_v60 = vld [vmem:[%s707_s5 + $0x1] ss:$0 sm:$0xff] }
  0x17   :  { %455 = vmatprep.subr.mxu1 %v56_v32  ;;  %419 = vmatpush3.msra.mxu0 %v85_v31  ;;  %v364_v30 = vld [vmem:[%s708_s6] ss:$0 sm:$0xff]  ;;  %p502_p4 = pnand %p501_p3, %p495_p0 }
  0x18   :  { %456 = vmatpush3.msra.mxu1 %v56_v32  ;;  %420 = vmatprep.subr.mxu0 %v84_v33  ;;  %v365_v32 = vld [vmem:[%s709_s7] ss:$0 sm:$0xff] }
  0x19   :  { %457 = vmatprep.subr.mxu1 %v55_v34  ;;  %421 = vmatpush3.msra.mxu0 %v84_v33 }
  0x1a   :  { %458 = vmatpush3.msra.mxu1 %v55_v34  ;;  %422 = vmatprep.subr.mxu0 %v83_v35 }
  0x1b   :  { %459 = vmatprep.subr.mxu1 %v54_v36  ;;  %423 = vmatpush3.msra.mxu0 %v83_v35 }
  0x1c   :  { %460 = vmatpush3.msra.mxu1 %v54_v36  ;;  %424 = vmatprep.subr.mxu0 %v82_v37 }
  0x1d   :  { %461 = vmatprep.subr.mxu1 %v53_v38  ;;  %425 = vmatpush3.msra.mxu0 %v82_v37 }
  0x1e   :  { %462 = vmatpush3.msra.mxu1 %v53_v38  ;;  %426 = vmatprep.subr.mxu0 %v81_v39 }
  0x1f   :  { %463 = vmatprep.subr.mxu1 %v52_v40  ;;  %427 = vmatpush3.msra.mxu0 %v81_v39 }
  0x20   :  { %464 = vmatpush3.msra.mxu1 %v52_v40  ;;  %428 = vmatprep.subr.mxu0 %v80_v41 }
  0x21   :  { %465 = vmatprep.subr.mxu1 %v51_v42  ;;  %429 = vmatpush3.msra.mxu0 %v80_v41 }
  0x22   :  { %466 = vmatpush3.msra.mxu1 %v51_v42  ;;  %430 = vmatprep.subr.mxu0 %v79_v43 }
  0x23   :  { %467 = vmatprep.subr.mxu1 %v50_v44  ;;  %431 = vmatpush3.msra.mxu0 %v79_v43 }
  0x24   :  { %468 = vmatpush3.msra.mxu1 %v50_v44  ;;  %432 = vmatprep.subr.mxu0 %v78_v45 }
  0x25   :  { %433 = vmatpush3.msra.mxu0 %v78_v45 }
  0x7d   :  { %v43_v48 = vpop.permute.xlu1 %42  ;;  %v40_v49 = vpop.permute.xlu0 %39 }
  0x7e   :  { %vm45_vm4 = vcmp.eq.s32.totalorder %v37_v47, %v43_v48  ;;  %vm44_vm5 = vcmp.eq.s32.totalorder %v37_v47, %v40_v49 }
  0x7f   :  { %469 = vmatprep.mubr.msk.f32.mxu1 %vm44_vm5, %v518_v50 }
  0x80   :  { %470 = vmatmul.mubr.msk.f32.vlgmr.msra.gmra.mxu1 %vm45_vm4, %v518_v50 }
  0x81   :  { %v71_v51 = vpop.permute.xlu1 %70  ;;  %v68_v52 = vpop.permute.xlu0 %67 }
  0x82   :  { %vm73_vm6 = vcmp.eq.s32.totalorder %v37_v47, %v71_v51  ;;  %vm72_vm7 = vcmp.eq.s32.totalorder %v37_v47, %v68_v52 }
  0x83   :  { %434 = vmatprep.mubr.msk.f32.mxu0 %vm72_vm7, %v518_v50 }
  0x84   :  { %435 = vmatmul.mubr.msk.f32.vlgmr.msra.gmra.mxu0 %vm73_vm6, %v518_v50 }
  0x85   :  { %v482_v53 = vpop.permute.xlu0 %481  ;;  %v487_v54 = vpop.permute.xlu1 %486 }
  0x86   :  { %v484_v55 = vunpack.i.h.bf16 %v482_v53  ;;  %v489_v58 = vunpack.i.h.bf16 %v487_v54  ;;  %v483_v59 = vunpack.i.l.bf16 %v482_v53  ;;  %v488_v62 = vunpack.i.l.bf16 %v487_v54 }
  0x88   :  { %v264_v63 = vmul.f32 %v484_v55, %v362_v56  ;;  %v287_v3 = vmul.f32 %v489_v58, %v363_v60  ;;  %v263_v4 = vmul.f32 %v483_v59, %v362_v56  ;;  %v286_v7 = vmul.f32 %v488_v62, %v363_v60 }
 0x140   :  { %v471_v57 = vpop.f32.mrf.mxu1 }
 0x142   :  { %v235_v1 = vpop.f32.mrf.mxu1 }
 0x144   :  { %v436_v61 = vpop.f32.mrf.mxu0 }
 0x145   :  { %v241_v0 = vadd.f32 %v471_v57, %v436_v61 }
 0x146   :  { %v160_v2 = vpop.f32.mrf.mxu0 }
 0x147   :  { %v266_v5 = vadd.f32 %v264_v63, %v241_v0  ;;  %v236_v6 = vadd.f32 %v235_v1, %v160_v2 }
 0x149   :  { %v265_v8 = vadd.f32 %v263_v4, %v236_v6  ;;  %v289_v9 = vadd.f32 %v287_v3, %v266_v5 }
 0x14b   :  { %v294_v10 = vsel %vm290_vm8, %v289_v9, 0.0  ;;  %v288_v11 = vadd.f32 %v286_v7, %v265_v8 }
 0x14c   :  { %295 = vadd.xlane.f32.xlu1 %v294_v10 }
 0x14d   :  { %v291_v12 = vsel %vm290_vm8, %v288_v11, 0.0 }
 0x14e   :  { %292 = vadd.xlane.f32.xlu0 %v291_v12 }
 0x1d5   :  { %v296_v13 = vpop.xlane.xlu1 %295 }
 0x1d6   :  { %v299_v14 = vmul.f32 0.03125, %v296_v13 }
 0x1d7   :  { %v293_v15 = vpop.xlane.xlu0 %292 }
 0x1d8   :  { %v298_v16 = vmul.f32 0.03125, %v293_v15  ;;  %v301_v17 = vsub.f32 %v289_v9, %v299_v14 }
 0x1da   :  { %v300_v18 = vsub.f32 %v288_v11, %v298_v16  ;;  %v303_v21 = vmul.f32 %v301_v17, %v301_v17 }
 0x1dc   :  { %v302_v19 = vmul.f32 %v300_v18, %v300_v18  ;;  %v307_v22 = vsel %vm290_vm8, %v303_v21, 0.0 }
 0x1de   :  { %v304_v20 = vsel %vm290_vm8, %v302_v19, 0.0 }
 0x1df   :  { %305 = vadd.xlane.f32.xlu0 %v304_v20 }
 0x1e3   :  { %308 = vadd.xlane.f32.xlu0 %v307_v22 }
 0x268   :  { %v306_v23 = vpop.xlane.xlu0 %305 }
 0x269   :  { %v310_v24 = vmul.f32 0.03125, %v306_v23 }
 0x26b   :  { %v312_v25 = vadd.f32 1e-12, %v310_v24 }
 0x26c   :  { %v309_v26 = vpop.xlane.xlu0 %308 }
 0x26d   :  { %490 = vrsqrt.f32 %v312_v25  ;;  %v311_v27 = vmul.f32 0.03125, %v309_v26 }
 0x26f   :  { %v313_v28 = vadd.f32 1e-12, %v311_v27 }
 0x271   :  { %492 = vrsqrt.f32 %v313_v28 }
 0x27a   :  { %v491_v29 = vpop.eup %490 }
 0x27b   :  { %v316_v31 = vmul.f32 %v491_v29, %v300_v18 }
 0x27d   :  { %v325_v33 = vmul.f32 %v364_v30, %v316_v31 }
 0x27e   :  { %v493_v34 = vpop.eup %492 }
 0x27f   :  { %v317_v35 = vmul.f32 %v493_v34, %v301_v17  ;;  %v334_v36 = vadd.f32 %v365_v32, %v325_v33 }
 0x281   :  { %v326_v37 = vmul.f32 %v364_v30, %v317_v35  ;;  %336 = vst.msk [vmem:[#allocation2] sm:$0xff] %vm290_vm8, %v334_v36 }
 0x283   :  { %v335_v38 = vadd.f32 %v365_v32, %v326_v37 }
 0x285   :  { %337 = vst.msk [vmem:[#allocation2 + $0x8] sm:$0xff] %vm290_vm8, %v335_v38 }
 0x286   :  { %505 = shalt.err (!%p502_p4)
}
 0x287   :  { %s520_s6 = smov 128   ;;  %s521_s7 = smov 8  }
 0x288   :  { %349 = dma.vmem_to_hbm [thread:$0]  %s344_s12, 256, %s710_s8, [#allocation3], %s520_s6, %s520_s6, %s521_s7  }
 0x289   :  { %514 = dma.done.wait [#allocation3], 256  }
 0x28a   :  { %515 = vsyncadd [#allocation3], 4294967040 }
 0x28b   :  { %353 = vsyncpa [#allocation3], 1 }

</bundles_post_ra>
